<compile_context>
chip_gen: v6e
topology: v6e:2x2x1
jax: 0.10.0
libtpu: 0.0.40
codegen_flags: <defaults>
</compile_context>

<pallas_src>
import functools

import jax
import jax.numpy as jnp
from jax.experimental import pallas as pl
from jax.experimental.pallas import tpu as pltpu


# --------------------------------------------------------------------------
# Tile helpers: always return exact divisors so no masking is ever needed.
# --------------------------------------------------------------------------
def _pick_lane_tile(n, cap=512):
    """Largest multiple-of-128 divisor of n that is <= cap; else full n."""
    if n <= cap or n % 128 != 0:
        return n
    for t in range(cap, 0, -128):
        if n % t == 0:
            return t
    return n


def _pick_sublane_tile(n, cap=256):
    """Largest multiple-of-8 divisor of n that is <= cap; else full n."""
    if n <= cap or n % 8 != 0:
        return n
    for t in range(cap, 0, -8):
        if n % t == 0:
            return t
    return n


# --------------------------------------------------------------------------
# Phase 1: gate kernel — mean over L (f32 accumulation) + excitation MLP.
# --------------------------------------------------------------------------
def _gate_kernel(x_ref, w1_ref, w2_ref, s_ref, acc_ref, *, inv_len, use_mxu):
    li = pl.program_id(0)

    @pl.when(li == 0)
    def _():
        acc_ref[...] = jnp.zeros_like(acc_ref)

    # Accumulate the length-sum in f32; x stays in its native dtype.
    acc_ref[...] += jnp.sum(x_ref[...], axis=-1, dtype=jnp.float32)

    @pl.when(li == pl.num_programs(0) - 1)
    def _():
        y = acc_ref[...] * inv_len                      # (B, C) mean, f32
        w1 = w1_ref[...].astype(jnp.float32)            # (C, Cr)
        w2 = w2_ref[...].astype(jnp.float32)            # (Cr, C)
        if use_mxu:
            h = jnp.maximum(
                jnp.dot(y, w1, preferred_element_type=jnp.float32), 0.0)
            s = jax.nn.sigmoid(
                jnp.dot(h, w2, preferred_element_type=jnp.float32))
        else:
            # Tiny excitation (C//r far below MXU tile): VPU broadcast + reduce.
            h = jnp.maximum(jnp.sum(y[:, :, None] * w1[None, :, :], axis=1), 0.0)
            s = jax.nn.sigmoid(jnp.sum(h[:, :, None] * w2[None, :, :], axis=1))
        s_ref[...] = s


# --------------------------------------------------------------------------
# Phase 2: elementwise scale kernel on the folded (B*C, L) view.
# --------------------------------------------------------------------------
def _scale_kernel(x_ref, s_ref, o_ref):
    gate = s_ref[...].astype(o_ref.dtype)               # (TM, 1), native dtype
    o_ref[...] = x_ref[...] * gate                      # broadcast over lanes


# --------------------------------------------------------------------------
# Wrapper
# --------------------------------------------------------------------------
def flayers_pallas(x, w1, w2):
    """x: (B, C, L); w1: (C, C//r); w2: (C//r, C) (pre-transposed vs torch).

    Returns x * sigmoid(relu(mean_L(x) @ w1) @ w2)[:, :, None], shape (B, C, L).
    """
    B, C, L = x.shape
    Cr = w1.shape[1]
    M = B * C
    itemsize = jnp.dtype(x.dtype).itemsize

    # ---------------- Phase 1: gate (B, C) in f32 ----------------
    tl_g = _pick_lane_tile(L)
    use_mxu = Cr >= 128          # module uses Flayers(2) -> Cr == 1 -> VPU path
    gate = pl.pallas_call(
        functools.partial(_gate_kernel, inv_len=1.0 / L, use_mxu=use_mxu),
        out_shape=jax.ShapeDtypeStruct((B, C), jnp.float32),
        grid_spec=pltpu.PrefetchScalarGridSpec(
            num_scalar_prefetch=0,
            grid=(L // tl_g,),
            in_specs=[
                pl.BlockSpec((B, C, tl_g), lambda l: (0, 0, l)),   # x, L-tiled
                pl.BlockSpec((C, Cr), lambda l: (0, 0)),           # W1 resident
                pl.BlockSpec((Cr, C), lambda l: (0, 0)),           # W2 resident
            ],
            out_specs=pl.BlockSpec((B, C), lambda l: (0, 0)),      # resident out
            scratch_shapes=[pltpu.VMEM((B, C), jnp.float32)],      # f32 accum
        ),
        compiler_params=pltpu.CompilerParams(
            dimension_semantics=("arbitrary",),        # L is a reduction axis
            vmem_limit_bytes=32 * 1024 * 1024,
        ),
        cost_estimate=pl.CostEstimate(
            flops=B * C * L + 4 * B * C * Cr,
            transcendentals=B * C,
            bytes_accessed=B * C * L * itemsize + 2 * C * Cr * 4 + B * C * 4,
        ),
    )(x, w1, w2)

    # ------- Phase 2: elementwise scale on a lane-dense (B*C, L) view -------
    x2 = x.reshape(M, L)          # fold batch into the sublane axis (C is tiny)
    s2 = gate.reshape(M, 1)
    tm = _pick_sublane_tile(M)
    tl = _pick_lane_tile(L)
    out2 = pl.pallas_call(
        _scale_kernel,
        out_shape=jax.ShapeDtypeStruct((M, L), x.dtype),
        grid_spec=pltpu.PrefetchScalarGridSpec(
            num_scalar_prefetch=0,
            grid=(M // tm, L // tl),
            in_specs=[
                pl.BlockSpec((tm, tl), lambda i, j: (i, j)),   # x tile
                pl.BlockSpec((tm, 1), lambda i, j: (i, 0)),    # gate rows
            ],
            out_specs=pl.BlockSpec((tm, tl), lambda i, j: (i, j)),
        ),
        compiler_params=pltpu.CompilerParams(
            dimension_semantics=("parallel", "parallel"),
            vmem_limit_bytes=32 * 1024 * 1024,
        ),
        cost_estimate=pl.CostEstimate(
            flops=M * L,
            transcendentals=0,
            bytes_accessed=2 * M * L * itemsize + M * 4,
        ),
    )(x2, s2)
    return out2.reshape(B, C, L)


# --------------------------------------------------------------------------
# Pure-JAX reference
# --------------------------------------------------------------------------
def flayers_reference(x, w1, w2):
    xf = x.astype(jnp.float32)
    y = jnp.mean(xf, axis=-1)                                    # (B, C)
    h = jnp.maximum(y @ w1.astype(jnp.float32), 0.0)             # (B, C//r)
    s = jax.nn.sigmoid(h @ w2.astype(jnp.float32))               # (B, C)
    return (xf * s[:, :, None]).astype(x.dtype)


if __name__ == "__main__":
    key = jax.random.PRNGKey(0)
    kx, k1, k2, kx2, k12, k22 = jax.random.split(key, 6)

    # Shapes implied by the module: FT_Fuse_EncoderLayer applies
    # self.fusion = Flayers(2) to enc_outputs of shape (batch, 2, d_model=128).
    B, C, L, reduction = 2, 2, 128, 2
    Cr = max(C // reduction, 1)
    x = jax.random.normal(kx, (B, C, L), dtype=jnp.float32)
    # Weights stored as (in_features, out_features) = nn.Linear.weight.T
    w1 = jax.random.normal(k1, (C, Cr), dtype=jnp.float32) * 0.1
    w2 = jax.random.normal(k2, (Cr, C), dtype=jnp.float32) * 0.1

    out = jax.block_until_ready(flayers_pallas(x, w1, w2))
    ref = flayers_reference(x, w1, w2)
    assert out.shape == (B, C, L)
    assert jnp.allclose(out, ref, atol=1e-5, rtol=1e-5), "mismatch vs reference"

    # Second config exercises the tiled paths (multi-step L reduction in the
    # gate kernel and a 2-D grid in the scale kernel).
    B2, C2, L2 = 4, 8, 1024
    Cr2 = C2 // 2
    xb = jax.random.normal(kx2, (B2, C2, L2), dtype=jnp.float32)
    w1b = jax.random.normal(k12, (C2, Cr2), dtype=jnp.float32) * 0.1
    w2b = jax.random.normal(k22, (Cr2, C2), dtype=jnp.float32) * 0.1
    outb = jax.block_until_ready(flayers_pallas(xb, w1b, w2b))
    refb = flayers_reference(xb, w1b, w2b)
    assert jnp.allclose(outb, refb, atol=1e-4, rtol=1e-4), "mismatch (tiled)"

    print("KERNEL_OK")
</pallas_src>

<mosaic_0001>
module attributes {stable_mosaic.version = 11 : i64} {
  func.func @_gate_kernel(%arg0: i32, %arg1: memref<2x2x128xf32, #tpu.memory_space<vmem>>, %arg2: memref<2x1xf32, #tpu.memory_space<vmem>>, %arg3: memref<1x2xf32, #tpu.memory_space<vmem>>, %arg4: memref<2x2xf32, #tpu.memory_space<vmem>>, %arg5: memref<2x2xf32, #tpu.memory_space<vmem>>) attributes {dimension_semantics = [#tpu.dimension_semantics<arbitrary>], iteration_bounds = array<i64: 1>, scalar_prefetch = 0 : i64, scratch_operands = 1 : i64, tpu.core_type = #tpu.core_type<tc>, window_params = [{transform_indices = @transform_0, window_bounds = array<i64: 2, 2, 128>}, {pipeline_mode = #tpu.pipeline_mode<synchronous>, transform_indices = @transform_1, window_bounds = array<i64: 2, 1>}, {pipeline_mode = #tpu.pipeline_mode<synchronous>, transform_indices = @transform_2, window_bounds = array<i64: 1, 2>}, {pipeline_mode = #tpu.pipeline_mode<synchronous>, transform_indices = @transform_3, window_bounds = array<i64: 2, 2>}]} {
    %c0_i32 = arith.constant 0 : i32
    %0 = arith.cmpi eq, %arg0, %c0_i32 : i32
    %1 = arith.extui %0 : i1 to i32
    %c0_i32_0 = arith.constant 0 : i32
    %2 = arith.cmpi ne, %1, %c0_i32_0 : i32
    scf.if %2 {
      %cst_9 = arith.constant 0.000000e+00 : f32
      %11 = vector.broadcast %cst_9 : f32 to vector<2x2xf32>
      %c0_10 = arith.constant 0 : index
      %c0_11 = arith.constant 0 : index
      %12 = vector.load %arg5[%c0_10, %c0_11] : memref<2x2xf32, #tpu.memory_space<vmem>>, vector<2x2xf32>
      tpu.vector_store %arg5[%c0_10, %c0_11], %11 {strides = array<i32>} : memref<2x2xf32, #tpu.memory_space<vmem>>, vector<2x2xf32>,
    } else {
    }
    %c0 = arith.constant 0 : index
    %c0_1 = arith.constant 0 : index
    %3 = vector.load %arg5[%c0, %c0_1] : memref<2x2xf32, #tpu.memory_space<vmem>>, vector<2x2xf32>
    %c0_2 = arith.constant 0 : index
    %c0_3 = arith.constant 0 : index
    %c0_4 = arith.constant 0 : index
    %4 = vector.load %arg1[%c0_2, %c0_3, %c0_4] : memref<2x2x128xf32, #tpu.memory_space<vmem>>, vector<2x2x128xf32>
    %cst = arith.constant dense<0.000000e+00> : vector<2x2xf32>
    %5 = vector.multi_reduction <add>, %4, %cst [2] : vector<2x2x128xf32> to vector<2x2xf32>
    %6 = arith.addf %3, %5 : vector<2x2xf32>
    %c0_5 = arith.constant 0 : index
    %c0_6 = arith.constant 0 : index
    %7 = vector.load %arg5[%c0_5, %c0_6] : memref<2x2xf32, #tpu.memory_space<vmem>>, vector<2x2xf32>
    tpu.vector_store %arg5[%c0_5, %c0_6], %6 {strides = array<i32>} : memref<2x2xf32, #tpu.memory_space<vmem>>, vector<2x2xf32>,
    %c0_i32_7 = arith.constant 0 : i32
    %8 = arith.cmpi eq, %arg0, %c0_i32_7 : i32
    %9 = arith.extui %8 : i1 to i32
    %c0_i32_8 = arith.constant 0 : i32
    %10 = arith.cmpi ne, %9, %c0_i32_8 : i32
    scf.if %10 {
      %c0_9 = arith.constant 0 : index
      %c0_10 = arith.constant 0 : index
      %11 = vector.load %arg5[%c0_9, %c0_10] : memref<2x2xf32, #tpu.memory_space<vmem>>, vector<2x2xf32>
      %cst_11 = arith.constant 7.812500e-03 : f32
      %12 = vector.broadcast %cst_11 : f32 to vector<2x2xf32>
      %13 = arith.mulf %11, %12 : vector<2x2xf32>
      %c0_12 = arith.constant 0 : index
      %c0_13 = arith.constant 0 : index
      %14 = vector.load %arg2[%c0_12, %c0_13] : memref<2x1xf32, #tpu.memory_space<vmem>>, vector<2x1xf32>
      %c0_14 = arith.constant 0 : index
      %c0_15 = arith.constant 0 : index
      %15 = vector.load %arg3[%c0_14, %c0_15] : memref<1x2xf32, #tpu.memory_space<vmem>>, vector<1x2xf32>
      %16 = vector.shape_cast %13 : vector<2x2xf32> to vector<2x2x1xf32>
      %17 = vector.shape_cast %14 : vector<2x1xf32> to vector<1x2x1xf32>
      %18 = vector.broadcast %17 : vector<1x2x1xf32> to vector<2x2x1xf32>
      %19 = arith.mulf %16, %18 : vector<2x2x1xf32>
      %cst_16 = arith.constant dense<0.000000e+00> : vector<2x1xf32>
      %20 = vector.multi_reduction <add>, %19, %cst_16 [1] : vector<2x2x1xf32> to vector<2x1xf32>
      %cst_17 = arith.constant 0.000000e+00 : f32
      %21 = vector.broadcast %cst_17 : f32 to vector<2x1xf32>
      %22 = arith.maximumf %20, %21 : vector<2x1xf32>
      %23 = vector.shape_cast %22 : vector<2x1xf32> to vector<2x1x1xf32>
      %24 = vector.shape_cast %15 : vector<1x2xf32> to vector<1x1x2xf32>
      %25 = vector.broadcast %23 : vector<2x1x1xf32> to vector<2x1x2xf32>
      %26 = vector.broadcast %24 : vector<1x1x2xf32> to vector<2x1x2xf32>
      %27 = arith.mulf %25, %26 : vector<2x1x2xf32>
      %cst_18 = arith.constant dense<0.000000e+00> : vector<2x2xf32>
      %28 = vector.multi_reduction <add>, %27, %cst_18 [1] : vector<2x1x2xf32> to vector<2x2xf32>
      %29 = arith.negf %28 : vector<2x2xf32>
      %30 = math.exp %29 : vector<2x2xf32>
      %cst_19 = arith.constant 1.000000e+00 : f32
      %31 = vector.broadcast %cst_19 : f32 to vector<2x2xf32>
      %32 = arith.addf %31, %30 : vector<2x2xf32>
      %33 = arith.divf %31, %32 : vector<2x2xf32>
      %c0_20 = arith.constant 0 : index
      %c0_21 = arith.constant 0 : index
      %34 = vector.load %arg4[%c0_20, %c0_21] : memref<2x2xf32, #tpu.memory_space<vmem>>, vector<2x2xf32>
      tpu.vector_store %arg4[%c0_20, %c0_21], %33 {strides = array<i32>} : memref<2x2xf32, #tpu.memory_space<vmem>>, vector<2x2xf32>,
    } else {
    }
    return
  }
  func.func @transform_0(%arg0: i32) -> (i32, i32, i32) {
    %c0_i32 = arith.constant 0 : i32
    %c0_i32_0 = arith.constant 0 : i32
    %c0_i32_1 = arith.constant 0 : i32
    return %c0_i32, %c0_i32_0, %arg0 : i32, i32, i32
  }
  func.func @transform_1(%arg0: i32) -> (i32, i32) {
    %c0_i32 = arith.constant 0 : i32
    %c0_i32_0 = arith.constant 0 : i32
    %c0_i32_1 = arith.constant 0 : i32
    return %c0_i32, %c0_i32_0 : i32, i32
  }
  func.func @transform_2(%arg0: i32) -> (i32, i32) {
    %c0_i32 = arith.constant 0 : i32
    %c0_i32_0 = arith.constant 0 : i32
    %c0_i32_1 = arith.constant 0 : i32
    return %c0_i32, %c0_i32_0 : i32, i32
  }
  func.func @transform_3(%arg0: i32) -> (i32, i32) {
    %c0_i32 = arith.constant 0 : i32
    %c0_i32_0 = arith.constant 0 : i32
    %c0_i32_1 = arith.constant 0 : i32
    return %c0_i32, %c0_i32_0 : i32, i32
  }
}

</mosaic_0001>

<bundles_post_ra>
// kernel: tpu_custom_call.1
= control target key start
LH: loop header
LB: loop body
LE: loop exit
PB: predicated region body
PF: predicated region fallthrough
CT: control target
= control target key end

     0   :  { %8 = vsyncpa [#allocation4], 0  ;;  %s274_s0 = inlined_call_operand.hbm [shape: f32[2,2,128], index: 0, kind: input, shape index: {}]   ;;  %s275_s1 = inlined_call_operand.vmem [shape: f32[2,1], index: 1, kind: input, shape index: {}]   ;;  %s276_s2 = inlined_call_operand.vmem [shape: f32[1,2], index: 2, kind: input, shape index: {}]   ;;  %s277_s3 = inlined_call_operand.hbm [shape: f32[2,2], index: 3, kind: output, shape index: {}]  }
   0x1   :  { %9 = vsyncpa [#allocation5], 0  ;;  %s226_s12 = smov [#allocation3]  }
   0x2   :  { %s15_s13 = sshll.u32 %s226_s12, 4  ;;  %s16_s13 = int_to_ptr.vmem [resolvable:$true] %s15_s13 }
   0x3   :  { %s190_s14 = scalar_lea.vmem %s16_s13, 64  ;;  %p195_p1 = scmp.lt.s32.totalorder %s16_s13, %s16_s13 }
   0x4   :  { %p191_p0 = scmp.ne.s32.totalorder %s16_s13, %s190_s14  ;;  %p196_p2 = scmp.lt.s32.totalorder %s190_s14, %s190_s14 }
   0x6   :  { %p197_p3 = por %p196_p2, %p195_p1 }
   0x8   :  { %p198_p4 = pnand %p197_p3, %p191_p0 }
   0xa   :  { %201 = shalt.err (!%p198_p4)
}
   0xb   :  { %s227_s15 = smov 32   ;;  %s228_s16 = smov 2  }
   0xc   :  { %21 = dma.hbm_to_vmem [thread:$0]  %s274_s0, 64, %s16_s13, [#allocation4], %s227_s15, %s227_s15, %s228_s16  }
   0xd   :  { %222 = dma.done.wait [#allocation4], 64  }
   0xe   :  { %223 = vsyncadd [#allocation4], 4294967232  ;;  %vm38_vm0 = vcmask 1041408   ;;  %v36_v0 = vld [vmem:[#allocation3] sm:$0x3]  ;;  %vm33_vm1 = vcmask 9216   ;;  %v47_v5 = vlaneseq }
   0xf   :  { %v37_v1 = vld [vmem:[#allocation3 + $0x2] sm:$0x3]  ;;  %v39_v2 = vsel %vm38_vm0, %v36_v0, 0.0  ;;  %v229_v4 = vmov 0.0   ;;  %vm57_vm2 = vcmask 1041409   ;;  %v230_v21 = vmov 0  }
  0x10   :  { %40 = vadd.xlane.f32.xlu0 %v39_v2  ;;  %v42_v3 = vsel %vm38_vm0, %v37_v1, 0.0  ;;  %34 = vst.msk [vmem:[#allocation2] sm:$0x3] %vm33_vm1, %v229_v4  ;;  %v48_v6 = vand.u32 127, %v47_v5  ;;  %v257_v7 = vshrl.u32 %v47_v5, 7  ;;  %173 = vset.pattern.permute.xlu1 %v230_v21  ;;  %vm86_vm3 = vcmask 1024  }
  0x11   :  { %172 = vset.pattern.permute.xlu0 %v230_v21  ;;  %v68_v23 = vld [vmem:[%s275_s1] sm:$0x3]  ;;  %v231_v55 = vmov 1966171168  }
  0x12   :  { %v51_v9 = vsub.s32 %v48_v6, %v257_v7  ;;  %v72_v16 = vsub.s32 0, %v257_v7  ;;  %v79_v20 = vsub.s32 1, %v257_v7  ;;  %v69_v44 = vld [vmem:[%s276_s2] sm:$0x1]  ;;  %v133_v56 = vunpack.c.l.s4 %v231_v55  ;;  %s232_s2 = smov [#allocation6]  }
  0x13   :  { %s154_s21 = sshll.u32 %s232_s2, 4  ;;  %s155_s21 = int_to_ptr.vmem [resolvable:$true] %s154_s21 }
  0x14   :  { %43 = vadd.xlane.f32.xlu0 %v42_v3  ;;  %v134_v57 = vunpack.c.0.s8 %v133_v56  ;;  %s202_s22 = scalar_lea.vmem %s155_s21, 32  ;;  %p207_p6 = scmp.lt.s32.totalorder %s155_s21, %s155_s21 }
  0x15   :  { %p203_p5 = scmp.ne.s32.totalorder %s155_s21, %s202_s22  ;;  %p208_p7 = scmp.lt.s32.totalorder %s202_s22, %s202_s22 }
  0x16   :  { %v137_v59 = vsub.s32 %v134_v57, %v257_v7 }
  0x17   :  { %v35_v12 = vld [vmem:[#allocation2] sm:$0x3]  ;;  %p209_p8 = por %p208_p7, %p207_p6 }
  0x19   :  { %p210_p9 = pnand %p209_p8, %p203_p5 }
  0x99   :  { %v41_v8 = vpop.xlane.xlu0 %40 }
  0x9a   :  { %v52_v11 = vrot.slane %v41_v8, %v51_v9 }
  0x9d   :  { %v44_v10 = vpop.xlane.xlu0 %43 }
  0x9e   :  { %v56_v13 = vrot.slane %v44_v10, %v51_v9 }
  0xa0   :  { %v58_v14 = vsel %vm57_vm2, %v56_v13, %v52_v11 }
  0xa1   :  { %v60_v15 = vadd.f32 %v58_v14, %v35_v12 }
  0xa3   :  { %62 = vst.msk [vmem:[#allocation2] sm:$0x3] %vm33_vm1, %v60_v15 }
  0xaa   :  { %v66_v17 = vld [vmem:[#allocation2] sm:$0x3] }
  0xab   :  { %v67_v18 = vmul.f32 0.0078125, %v66_v17 }
  0xad   :  { %v73_v19 = vrot.slane %v67_v18, %v72_v16  ;;  %v80_v22 = vrot.slane %v67_v18, %v79_v20 }
  0xaf   :  { %75 = vbcast.lane.b32.xlu1 %v73_v19, 256 }
  0xb3   :  { %82 = vbcast.lane.b32.xlu1 %v80_v22, 256 }
 0x121   :  { %v76_v24 = vpop.permute.xlu1 %75 }
 0x122   :  { %v84_v25 = vmul.f32 %v76_v24, %v68_v23 }
 0x124   :  { %v87_v26 = vsel %vm86_vm3, %v84_v25, 0.0 }
 0x125   :  { %v88_v27 = vrot.slane %v87_v26, 4  ;;  %v83_v28 = vpop.permute.xlu1 %82 }
 0x126   :  { %v85_v29 = vmul.f32 %v83_v28, %v68_v23 }
 0x127   :  { %v89_v30 = vadd.f32 %v88_v27, %v87_v26 }
 0x128   :  { %v94_v31 = vsel %vm86_vm3, %v85_v29, 0.0 }
 0x129   :  { %v90_v32 = vrot.slane %v89_v30, 2  ;;  %v95_v33 = vrot.slane %v94_v31, 4 }
 0x12b   :  { %v91_v34 = vadd.f32 %v90_v32, %v89_v30  ;;  %v96_v35 = vadd.f32 %v95_v33, %v94_v31 }
 0x12d   :  { %v97_v36 = vrot.slane %v96_v35, 2  ;;  %v92_v37 = vrot.slane %v91_v34, 1 }
 0x12f   :  { %v98_v38 = vadd.f32 %v97_v36, %v96_v35  ;;  %v93_v39 = vadd.f32 %v92_v37, %v91_v34 }
 0x131   :  { %v101_v40 = vmax.f32 %v93_v39, 0.0  ;;  %v99_v41 = vrot.slane %v98_v38, 1 }
 0x133   :  { %105 = vperm.xlu0 %172, %v101_v40   ;;  %v100_v42 = vadd.f32 %v99_v41, %v98_v38 }
 0x135   :  { %v102_v43 = vmax.f32 %v100_v42, 0.0 }
 0x137   :  { %110 = vperm.xlu1 %173, %v102_v43  }
 0x1ae   :  { %v106_v45 = vpop.permute.xlu0 %105 }
 0x1af   :  { %v113_v46 = vmul.f32 %v106_v45, %v69_v44 }
 0x1b1   :  { %v163_v47 = vmul.f32 -1.442695, %v113_v46 }
 0x1b2   :  { %v111_v48 = vpop.permute.xlu1 %110 }
 0x1b3   :  { %174 = vpow2.f32 %v163_v47  ;;  %v114_v49 = vmul.f32 %v111_v48, %v69_v44 }
 0x1b5   :  { %v164_v50 = vmul.f32 -1.442695, %v114_v49 }
 0x1b7   :  { %176 = vpow2.f32 %v164_v50 }
 0x1c0   :  { %v175_v51 = vpop.eup %174 }
 0x1c1   :  { %v123_v52 = vadd.f32 1.0, %v175_v51 }
 0x1c3   :  { %178 = vrcp.f32 %v123_v52 }
 0x1c4   :  { %v177_v53 = vpop.eup %176 }
 0x1c5   :  { %v124_v54 = vadd.f32 1.0, %v177_v53 }
 0x1c7   :  { %180 = vrcp.f32 %v124_v54 }
 0x1d0   :  { %v179_v58 = vpop.eup %178 }
 0x1d4   :  { %v181_v60 = vpop.eup %180 }
 0x1d5   :  { %v131_v61 = vcombine.low %v179_v58, %v181_v60 }
 0x1d7   :  { %v138_v62 = vrot.slane %v131_v61, %v137_v59 }
 0x1d9   :  { %v145_v63 = vrot.slane %v138_v62, %v137_v59 }
 0x1db   :  { %147 = vst.msk [vmem:[#allocation6] sm:$0x3] %vm33_vm1, %v145_v63 }
 0x1dc   :  { %213 = shalt.err (!%p210_p9)
}
 0x1dd   :  { %157 = dma.vmem_to_hbm [thread:$0]  %s155_s21, 32, %s277_s3, [#allocation5]  }
 0x1de   :  { %224 = dma.done.wait [#allocation5], 32  }
 0x1df   :  { %225 = vsyncadd [#allocation5], 4294967264 }
 0x1e0   :  { %161 = vsyncpa [#allocation4], 1 }
 0x1e1   :  { %162 = vsyncpa [#allocation5], 1 }

</bundles_post_ra>
